<compile_context>
chip_gen: v6e
topology: v6e:2x2x1
jax: 0.10.0
libtpu: 0.0.40
codegen_flags: <defaults>
</compile_context>

<pallas_src>
import functools

import jax
import jax.numpy as jnp
from jax.experimental import pallas as pl
from jax.experimental.pallas import tpu as pltpu


def actor_kernel(x_ref, w1_ref, b1_ref, w2_ref, b2_ref, w3_ref, b3_ref, o_ref):
    # Feature-major: batch on lanes.  x: [S, TB], weights: [out, in], b: [out, 1]
    x = x_ref[...]                                   # [S, TB]

    # ---- layer 1 on the VPU: K = state_dim is far too small for the MXU ----
    h1 = b1_ref[...]                                 # [H1, 1] -> broadcasts
    for k in range(x_ref.shape[0]):                  # static unrolled loop (S)
        h1 = h1 + w1_ref[:, k:k + 1] * x[k:k + 1, :]
    h1 = jnp.maximum(h1, 0.0)                        # ReLU      [H1, TB]

    # ---- layer 2 on the MXU ----
    h2 = jnp.dot(w2_ref[...], h1, preferred_element_type=jnp.float32) + b2_ref[...]
    h2 = jnp.maximum(h2, 0.0)                        # ReLU      [H2, TB]

    # ---- layer 3 on the MXU; output is [A, TB], lane-dense, unpadded ----
    y = jnp.dot(w3_ref[...], h2, preferred_element_type=jnp.float32) + b3_ref[...]
    o_ref[...] = jnp.tanh(y)                         # [A, TB]


@functools.partial(jax.jit, static_argnames=("block_batch",))
def actor_forward(x, kernel_params, *, block_batch=4096):
    """Fused 3-layer MLP forward. x: [B, S]; kernel_params from prepare_actor_params."""
    w1t, b1t, w2t, b2t, w3t, b3t = kernel_params
    B, S = x.shape
    H1 = w1t.shape[0]
    H2 = w2t.shape[0]
    A = w3t.shape[0]

    # Batch tile: batch lives on the lane axis -> multiple of 128 lanes.
    # block_batch is the main tuning knob (on v7x, keep it small enough that a
    # large batch spans >=2 tiles so both TensorCores get work).
    B128 = ((B + 127) // 128) * 128
    TB = max(128, (min(block_batch, B128) // 128) * 128)
    B_pad = ((B + TB - 1) // TB) * TB

    x_t = x.T                                        # [S, B] feature-major
    if B_pad != B:
        x_t = jnp.pad(x_t, ((0, 0), (0, B_pad - B)))

    grid = (B_pad // TB,)

    cost = pl.CostEstimate(
        flops=2 * B_pad * (S * H1 + H1 * H2 + H2 * A),
        transcendentals=B_pad * A,
        bytes_accessed=4 * (B_pad * S + B_pad * A
                            + S * H1 + H1 + H1 * H2 + H2 + H2 * A + A),
    )

    out_t = pl.pallas_call(
        actor_kernel,
        out_shape=jax.ShapeDtypeStruct((A, B_pad), jnp.float32),
        grid=grid,
        in_specs=[
            pl.BlockSpec((S, TB), lambda i: (0, i)),     # x: streamed per tile
            pl.BlockSpec((H1, S), lambda i: (0, 0)),     # weights/biases:
            pl.BlockSpec((H1, 1), lambda i: (0, 0)),     # constant index_map
            pl.BlockSpec((H2, H1), lambda i: (0, 0)),    # -> DMA'd once,
            pl.BlockSpec((H2, 1), lambda i: (0, 0)),     #    VMEM-resident
            pl.BlockSpec((A, H2), lambda i: (0, 0)),
            pl.BlockSpec((A, 1), lambda i: (0, 0)),
        ],
        out_specs=pl.BlockSpec((A, TB), lambda i: (0, i)),
        compiler_params=pltpu.CompilerParams(
            dimension_semantics=("parallel",),
        ),
        cost_estimate=cost,
    )(x_t, w1t, b1t, w2t, b2t, w3t, b3t)

    return out_t[:, :B].T                            # back to [B, A]


def init_actor_params(key, state_dim, action_dim):
    """Init mimicking PyTorch nn.Linear default: U[-1/sqrt(fan_in), +1/sqrt(fan_in)]."""
    def linear(k, fan_in, fan_out):
        kw, kb = jax.random.split(k)
        bound = 1.0 / jnp.sqrt(fan_in)
        # stored as [in, out] (transposed vs. PyTorch's [out, in])
        w = jax.random.uniform(kw, (fan_in, fan_out), jnp.float32, -bound, bound)
        b = jax.random.uniform(kb, (1, fan_out), jnp.float32, -bound, bound)
        return w, b

    k1, k2, k3 = jax.random.split(key, 3)
    w1, b1 = linear(k1, state_dim, 64)
    w2, b2 = linear(k2, 64, 64)
    w3, b3 = linear(k3, 64, action_dim)
    return (w1, b1, w2, b2, w3, b3)


def prepare_actor_params(params):
    """One-time prep (out of the hot path): transpose to feature-major kernel layout."""
    w1, b1, w2, b2, w3, b3 = params
    return (w1.T, b1.reshape(-1, 1),
            w2.T, b2.reshape(-1, 1),
            w3.T, b3.reshape(-1, 1))


def actor_reference(x, params):
    w1, b1, w2, b2, w3, b3 = params
    h1 = jnp.maximum(x @ w1 + b1, 0.0)
    h2 = jnp.maximum(h1 @ w2 + b2, 0.0)
    return jnp.tanh(h2 @ w3 + b3)


if __name__ == "__main__":
    # MountainCarContinuous-v0: state_dim=2, action_dim=1
    state_dim, action_dim, batch = 2, 1, 8

    key = jax.random.PRNGKey(0)
    kx, kp = jax.random.split(key)
    x = jax.random.normal(kx, (batch, state_dim), dtype=jnp.float32)
    params = init_actor_params(kp, state_dim, action_dim)
    kparams = prepare_actor_params(params)   # done once, outside the hot path

    out = jax.block_until_ready(actor_forward(x, kparams))
    ref = actor_reference(x, params)
    assert out.shape == (batch, action_dim)
    assert jnp.allclose(out, ref, atol=1e-5, rtol=1e-5)

    # Batch not a multiple of the lane tile (padding path).
    x2 = jax.random.normal(jax.random.PRNGKey(1), (13, state_dim), dtype=jnp.float32)
    out2 = jax.block_until_ready(actor_forward(x2, kparams))
    assert out2.shape == (13, action_dim)
    assert jnp.allclose(out2, actor_reference(x2, params), atol=1e-5, rtol=1e-5)

    # Multi-tile batch (exercises the grid / streaming path).
    x3 = jax.random.normal(jax.random.PRNGKey(2), (300, state_dim), dtype=jnp.float32)
    out3 = jax.block_until_ready(actor_forward(x3, kparams, block_batch=128))
    assert out3.shape == (300, action_dim)
    assert jnp.allclose(out3, actor_reference(x3, params), atol=1e-5, rtol=1e-5)

    print("KERNEL_OK")
</pallas_src>

<mosaic_0001>
module attributes {stable_mosaic.version = 11 : i64} {
  func.func @actor_kernel(%arg0: i32, %arg1: memref<2x128xf32, #tpu.memory_space<vmem>>, %arg2: memref<64x2xf32, #tpu.memory_space<vmem>>, %arg3: memref<64x1xf32, #tpu.memory_space<vmem>>, %arg4: memref<64x64xf32, #tpu.memory_space<vmem>>, %arg5: memref<64x1xf32, #tpu.memory_space<vmem>>, %arg6: memref<1x64xf32, #tpu.memory_space<vmem>>, %arg7: memref<1x1xf32, #tpu.memory_space<vmem>>, %arg8: memref<1x128xf32, #tpu.memory_space<vmem>>) attributes {dimension_semantics = [#tpu.dimension_semantics<parallel>], iteration_bounds = array<i64: 1>, scalar_prefetch = 0 : i64, scratch_operands = 0 : i64, tpu.core_type = #tpu.core_type<tc>, window_params = [{transform_indices = @transform_0, window_bounds = array<i64: 2, 128>}, {pipeline_mode = #tpu.pipeline_mode<synchronous>, transform_indices = @transform_1, window_bounds = array<i64: 64, 2>}, {pipeline_mode = #tpu.pipeline_mode<synchronous>, transform_indices = @transform_2, window_bounds = array<i64: 64, 1>}, {pipeline_mode = #tpu.pipeline_mode<synchronous>, transform_indices = @transform_3, window_bounds = array<i64: 64, 64>}, {pipeline_mode = #tpu.pipeline_mode<synchronous>, transform_indices = @transform_4, window_bounds = array<i64: 64, 1>}, {pipeline_mode = #tpu.pipeline_mode<synchronous>, transform_indices = @transform_5, window_bounds = array<i64: 1, 64>}, {pipeline_mode = #tpu.pipeline_mode<synchronous>, transform_indices = @transform_6, window_bounds = array<i64: 1, 1>}, {transform_indices = @transform_7, window_bounds = array<i64: 1, 128>}]} {
    %c0 = arith.constant 0 : index
    %c0_0 = arith.constant 0 : index
    %0 = vector.load %arg1[%c0, %c0_0] : memref<2x128xf32, #tpu.memory_space<vmem>>, vector<2x128xf32>
    %c0_1 = arith.constant 0 : index
    %c0_2 = arith.constant 0 : index
    %1 = vector.load %arg3[%c0_1, %c0_2] : memref<64x1xf32, #tpu.memory_space<vmem>>, vector<64x1xf32>
    %c0_3 = arith.constant 0 : index
    %c0_4 = arith.constant 0 : index
    %2 = vector.load %arg2[%c0_3, %c0_4] : memref<64x2xf32, #tpu.memory_space<vmem>>, vector<64x1xf32>
    %3 = vector.extract_strided_slice %0 {offsets = [0, 0], sizes = [1, 128], strides = [1, 1]} : vector<2x128xf32> to vector<1x128xf32>
    %4 = vector.broadcast %2 : vector<64x1xf32> to vector<64x128xf32>
    %5 = vector.broadcast %3 : vector<1x128xf32> to vector<64x128xf32>
    %6 = arith.mulf %4, %5 : vector<64x128xf32>
    %7 = vector.broadcast %1 : vector<64x1xf32> to vector<64x128xf32>
    %8 = arith.addf %7, %6 : vector<64x128xf32>
    %c0_5 = arith.constant 0 : index
    %c1 = arith.constant 1 : index
    %9 = vector.load %arg2[%c0_5, %c1] : memref<64x2xf32, #tpu.memory_space<vmem>>, vector<64x1xf32>
    %10 = vector.extract_strided_slice %0 {offsets = [1, 0], sizes = [1, 128], strides = [1, 1]} : vector<2x128xf32> to vector<1x128xf32>
    %11 = vector.broadcast %9 : vector<64x1xf32> to vector<64x128xf32>
    %12 = vector.broadcast %10 : vector<1x128xf32> to vector<64x128xf32>
    %13 = arith.mulf %11, %12 : vector<64x128xf32>
    %14 = arith.addf %8, %13 : vector<64x128xf32>
    %cst = arith.constant 0.000000e+00 : f32
    %15 = vector.broadcast %cst : f32 to vector<64x128xf32>
    %16 = arith.maximumf %14, %15 : vector<64x128xf32>
    %c0_6 = arith.constant 0 : index
    %c0_7 = arith.constant 0 : index
    %17 = vector.load %arg4[%c0_6, %c0_7] : memref<64x64xf32, #tpu.memory_space<vmem>>, vector<64x64xf32>
    %cst_8 = arith.constant dense<0.000000e+00> : vector<64x128xf32>
    %18 = tpu.matmul %17, %16, %cst_8 {dimension_numbers = #tpu.dot_dimension_numbers<[1], [0], [0], [1], [0, 0, 1, 1], [], []>} : vector<64x64xf32>, vector<64x128xf32>, vector<64x128xf32> -> vector<64x128xf32>
    %c0_9 = arith.constant 0 : index
    %c0_10 = arith.constant 0 : index
    %19 = vector.load %arg5[%c0_9, %c0_10] : memref<64x1xf32, #tpu.memory_space<vmem>>, vector<64x1xf32>
    %20 = vector.broadcast %19 : vector<64x1xf32> to vector<64x128xf32>
    %21 = arith.addf %18, %20 : vector<64x128xf32>
    %cst_11 = arith.constant 0.000000e+00 : f32
    %22 = vector.broadcast %cst_11 : f32 to vector<64x128xf32>
    %23 = arith.maximumf %21, %22 : vector<64x128xf32>
    %c0_12 = arith.constant 0 : index
    %c0_13 = arith.constant 0 : index
    %24 = vector.load %arg6[%c0_12, %c0_13] : memref<1x64xf32, #tpu.memory_space<vmem>>, vector<1x64xf32>
    %cst_14 = arith.constant dense<0.000000e+00> : vector<1x128xf32>
    %25 = tpu.matmul %24, %23, %cst_14 {dimension_numbers = #tpu.dot_dimension_numbers<[1], [0], [0], [1], [0, 0, 1, 1], [], []>} : vector<1x64xf32>, vector<64x128xf32>, vector<1x128xf32> -> vector<1x128xf32>
    %c0_15 = arith.constant 0 : index
    %c0_16 = arith.constant 0 : index
    %26 = vector.load %arg7[%c0_15, %c0_16] : memref<1x1xf32, #tpu.memory_space<vmem>>, vector<1x1xf32>
    %27 = vector.broadcast %26 : vector<1x1xf32> to vector<1x128xf32>
    %28 = arith.addf %25, %27 : vector<1x128xf32>
    %29 = math.tanh %28 : vector<1x128xf32>
    %c0_17 = arith.constant 0 : index
    %c0_18 = arith.constant 0 : index
    %30 = vector.load %arg8[%c0_17, %c0_18] : memref<1x128xf32, #tpu.memory_space<vmem>>, vector<1x128xf32>
    tpu.vector_store %arg8[%c0_17, %c0_18], %29 {strides = array<i32>} : memref<1x128xf32, #tpu.memory_space<vmem>>, vector<1x128xf32>,
    return
  }
  func.func @transform_0(%arg0: i32) -> (i32, i32) {
    %c0_i32 = arith.constant 0 : i32
    %c0_i32_0 = arith.constant 0 : i32
    return %c0_i32, %arg0 : i32, i32
  }
  func.func @transform_1(%arg0: i32) -> (i32, i32) {
    %c0_i32 = arith.constant 0 : i32
    %c0_i32_0 = arith.constant 0 : i32
    %c0_i32_1 = arith.constant 0 : i32
    return %c0_i32, %c0_i32_0 : i32, i32
  }
  func.func @transform_2(%arg0: i32) -> (i32, i32) {
    %c0_i32 = arith.constant 0 : i32
    %c0_i32_0 = arith.constant 0 : i32
    %c0_i32_1 = arith.constant 0 : i32
    return %c0_i32, %c0_i32_0 : i32, i32
  }
  func.func @transform_3(%arg0: i32) -> (i32, i32) {
    %c0_i32 = arith.constant 0 : i32
    %c0_i32_0 = arith.constant 0 : i32
    %c0_i32_1 = arith.constant 0 : i32
    return %c0_i32, %c0_i32_0 : i32, i32
  }
  func.func @transform_4(%arg0: i32) -> (i32, i32) {
    %c0_i32 = arith.constant 0 : i32
    %c0_i32_0 = arith.constant 0 : i32
    %c0_i32_1 = arith.constant 0 : i32
    return %c0_i32, %c0_i32_0 : i32, i32
  }
  func.func @transform_5(%arg0: i32) -> (i32, i32) {
    %c0_i32 = arith.constant 0 : i32
    %c0_i32_0 = arith.constant 0 : i32
    %c0_i32_1 = arith.constant 0 : i32
    return %c0_i32, %c0_i32_0 : i32, i32
  }
  func.func @transform_6(%arg0: i32) -> (i32, i32) {
    %c0_i32 = arith.constant 0 : i32
    %c0_i32_0 = arith.constant 0 : i32
    %c0_i32_1 = arith.constant 0 : i32
    return %c0_i32, %c0_i32_0 : i32, i32
  }
  func.func @transform_7(%arg0: i32) -> (i32, i32) {
    %c0_i32 = arith.constant 0 : i32
    %c0_i32_0 = arith.constant 0 : i32
    return %c0_i32, %arg0 : i32, i32
  }
}

</mosaic_0001>

<bundles_post_ra>
// kernel: actor_forward.1
= control target key start
LH: loop header
LB: loop body
LE: loop exit
PB: predicated region body
PF: predicated region fallthrough
CT: control target
= control target key end

     0   :  { %v586_v0 = vmov 0   ;;  %v587_v4 = vmov 1   ;;  %vm261_vm0 = vcmask 523264   ;;  %v85_v29 = vlaneseq  ;;  %s775_s2 = inlined_call_operand.vmem [shape: f32[64,1], index: 2, kind: input, shape index: {}]   ;;  %s776_s1 = inlined_call_operand.vmem [shape: f32[64,2], index: 1, kind: input, shape index: {}]   ;;  %s777_s4 = inlined_call_operand.vmem [shape: f32[64,1], index: 4, kind: input, shape index: {}]   ;;  %s778_s3 = inlined_call_operand.vmem [shape: f32[64,64], index: 3, kind: input, shape index: {}]   ;;  %s779_s6 = inlined_call_operand.<no memory space> [shape: f32[1,1], index: 6, kind: input, shape index: {}]   ;;  %s780_s0 = inlined_call_operand.vmem [shape: f32[2,128], index: 0, kind: input, shape index: {}]   ;;  %s781_s5 = inlined_call_operand.vmem [shape: f32[1,64], index: 5, kind: input, shape index: {}]   ;;  %s782_s7 = inlined_call_operand.vmem [shape: f32[1,128], index: 7, kind: output, shape index: {}]  }
   0x1   :  { %575 = vset.pattern.permute.xlu1 %v586_v0  ;;  %574 = vset.pattern.permute.xlu0 %v586_v0  ;;  %v36_v1 = vld [vmem:[%s775_s2 + $0x38] sm:$0xff]  ;;  %v43_v3 = vld [vmem:[%s776_s1 + $0x30] sm:$0xff]  ;;  %v42_v5 = vld [vmem:[%s776_s1 + $0x28] sm:$0xff]  ;;  %v12_v25 = vstv %s779_s6  ;;  %vm589_vm1 = vmmov 0  }
   0x2   :  { %v44_v2 = vld [vmem:[%s776_s1 + $0x38] sm:$0xff]  ;;  %134 = vperm.xlu1 %575, %v36_v1   ;;  %v35_v6 = vld [vmem:[%s775_s2 + $0x30] sm:$0xff]  ;;  %v33_v7 = vld [vmem:[%s775_s2 + $0x20] sm:$0xff]  ;;  %13 = vst [vmem:[#allocation2] sm:$0x1] %v12_v25  ;;  %v709_v30 = vshrl.u32 %v85_v29, 7 }
   0x3   :  { %82 = vperm.xlu0 %574, %v44_v2   ;;  %v41_v8 = vld [vmem:[%s776_s1 + $0x20] sm:$0xff]  ;;  %v32_v9 = vld [vmem:[%s775_s2 + $0x18] sm:$0xff]  ;;  %v34_v10 = vld [vmem:[%s775_s2 + $0x28] sm:$0xff] }
   0x4   :  { %v38_v11 = vld [vmem:[%s776_s1 + $0x8] sm:$0xff]  ;;  %v40_v12 = vld [vmem:[%s776_s1 + $0x18] sm:$0xff]  ;;  %v39_v13 = vld [vmem:[%s776_s1 + $0x10] sm:$0xff]  ;;  %v87_v31 = vsub.s32 0, %v709_v30  ;;  %v179_v34 = vsub.s32 1, %v709_v30 }
   0x5   :  { %v37_v14 = vld [vmem:[%s776_s1] sm:$0xff]  ;;  %v31_v15 = vld [vmem:[%s775_s2 + $0x10] sm:$0xff]  ;;  %v30_v16 = vld [vmem:[%s775_s2 + $0x8] sm:$0xff] }
   0x6   :  { %576 = vset.pattern.permute.xlu1 %v587_v4  ;;  %v29_v17 = vld [vmem:[%s775_s2] sm:$0xff]  ;;  %v220_v18 = vld [vmem:[%s777_s4 + $0x38] sm:$0xff]  ;;  %v218_v20 = vld [vmem:[%s777_s4 + $0x28] sm:$0xff] }
   0x7   :  { %77 = vperm.xlu0 %574, %v43_v3   ;;  %174 = vperm.xlu1 %576, %v44_v2   ;;  %v205_v19 = vld [vmem:[%s778_s3] sm:$0xff]  ;;  %v215_v22 = vld [vmem:[%s777_s4 + $0x10] sm:$0xff]  ;;  %v216_v26 = vld [vmem:[%s777_s4 + $0x18] sm:$0xff] }
   0x8   :  { %539 = vmatprep.mubr.msk.f32.mxu0 %vm261_vm0, %v205_v19  ;;  %v217_v21 = vld [vmem:[%s777_s4 + $0x20] sm:$0xff]  ;;  %v219_v23 = vld [vmem:[%s777_s4 + $0x30] sm:$0xff]  ;;  %v214_v27 = vld [vmem:[%s777_s4 + $0x8] sm:$0xff] }
   0x9   :  { %v213_v24 = vld [vmem:[%s777_s4] sm:$0xff] }
   0xa   :  { %v400_v28 = vld [vmem:[#allocation2] sm:$0x1] }
   0xb   :  { %72 = vperm.xlu0 %574, %v42_v5   ;;  %577 = vset.pattern.permute.xlu1 %v586_v0  ;;  %v28_v32 = vld [vmem:[%s780_s0] sm:$0x3] }
   0xc   :  { %129 = vperm.xlu1 %577, %v35_v6   ;;  %v717_v33 = vrot.slane %v28_v32, %v87_v31  ;;  %v721_v38 = vrot.slane %v28_v32, %v179_v34 }
   0xf   :  { %119 = vperm.xlu0 %574, %v33_v7  }
  0x10   :  { %67 = vperm.xlu1 %577, %v41_v8  }
  0x13   :  { %114 = vperm.xlu0 %574, %v32_v9  }
  0x14   :  { %124 = vperm.xlu1 %577, %v34_v10  }
  0x17   :  { %52 = vperm.xlu0 %574, %v38_v11  }
  0x18   :  { %62 = vperm.xlu1 %577, %v40_v12  }
  0x1b   :  { %581 = vset.pattern.permute.xlu0 %v587_v4 }
  0x1c   :  { %170 = vperm.xlu0 %581, %v43_v3   ;;  %578 = vset.pattern.permute.xlu1 %v587_v4 }
  0x1d   :  { %162 = vperm.xlu1 %578, %v41_v8  }
  0x20   :  { %166 = vperm.xlu0 %581, %v42_v5  }
  0x21   :  { %579 = vset.pattern.permute.xlu1 %v586_v0 }
  0x22   :  { %57 = vperm.xlu1 %579, %v39_v13  }
  0x24   :  { %154 = vperm.xlu0 %581, %v39_v13  }
  0x26   :  { %580 = vset.pattern.permute.xlu1 %v587_v4 }
  0x27   :  { %158 = vperm.xlu1 %580, %v40_v12  }
  0x28   :  { %150 = vperm.xlu0 %581, %v38_v11  }
  0x2b   :  { %582 = vset.pattern.permute.xlu1 %v586_v0 }
  0x2c   :  { %146 = vperm.xlu0 %581, %v37_v14   ;;  %109 = vperm.xlu1 %582, %v31_v15  }
  0x30   :  { %583 = vset.pattern.permute.xlu0 %v586_v0  ;;  %47 = vperm.xlu1 %582, %v37_v14  }
  0x31   :  { %253 = vperm.xlu0 %583, %v219_v23  }
  0x34   :  { %104 = vperm.xlu1 %582, %v30_v16  }
  0x35   :  { %238 = vperm.xlu0 %583, %v216_v26  }
  0x38   :  { %99 = vperm.xlu1 %582, %v29_v17  }
  0x39   :  { %228 = vperm.xlu0 %583, %v214_v27  }
  0x3c   :  { %258 = vperm.xlu1 %582, %v220_v18  }
  0x3d   :  { %403 = vperm.xlu0 %583, %v400_v28  }
  0x40   :  { %248 = vperm.xlu1 %582, %v218_v20  }
  0x44   :  { %243 = vperm.xlu1 %582, %v217_v21  }
  0x48   :  { %233 = vperm.xlu1 %582, %v215_v22  }
  0x4c   :  { %223 = vperm.xlu1 %582, %v213_v24  }
  0x7d   :  { %v135_v35 = vpop.permute.xlu1 %134 }
  0x7e   :  { %v83_v36 = vpop.permute.xlu0 %82 }
  0x7f   :  { %v96_v37 = vmul.f32 %v717_v33, %v83_v36 }
  0x81   :  { %v144_v41 = vadd.f32 %v135_v35, %v96_v37 }
  0x82   :  { %v78_v39 = vpop.permute.xlu0 %77  ;;  %v175_v40 = vpop.permute.xlu1 %174 }
  0x83   :  { %v188_v42 = vmul.f32 %v721_v38, %v175_v40  ;;  %v95_v52 = vmul.f32 %v717_v33, %v78_v39  ;;  %v206_v40 = vld [vmem:[%s778_s3 + $0x8] sm:$0xff] }
  0x85   :  { %v196_v44 = vadd.f32 %v188_v42, %v144_v41  ;;  %v207_v41 = vld [vmem:[%s778_s3 + $0x10] sm:$0xff]  ;;  %v210_v42 = vld [vmem:[%s778_s3 + $0x28] sm:$0xff] }
  0x86   :  { %v73_v43 = vpop.permute.xlu0 %72 }
  0x87   :  { %v130_v45 = vpop.permute.xlu1 %129  ;;  %v204_v46 = vmax.f32 %v196_v44, 0.0  ;;  %v94_v59 = vmul.f32 %v717_v33, %v73_v43  ;;  %v211_v43 = vld [vmem:[%s778_s3 + $0x30] sm:$0xff]  ;;  %v212_v44 = vld [vmem:[%s778_s3 + $0x38] sm:$0xff] }
  0x88   :  { %v143_v55 = vadd.f32 %v130_v45, %v95_v52  ;;  %v588_v45 = vmov 0.0  }
  0x89   :  { %523 = vmatprep.subr.mxu0 %v204_v46  ;;  %551 = vmatprep.subr.mxu1 %v588_v45 }
  0x8a   :  { %v120_v47 = vpop.permute.xlu0 %119  ;;  %524 = vmatpush3.msra.mxu0 %v204_v46  ;;  %567 = vmatprep.mubr.msk.f32.mxu1 %vm589_vm1, %v588_v45 }
  0x8b   :  { %v68_v48 = vpop.permute.xlu1 %67 }
  0x8c   :  { %v93_v56 = vmul.f32 %v717_v33, %v68_v48 }
  0x8e   :  { %v115_v49 = vpop.permute.xlu0 %114  ;;  %v141_v63 = vadd.f32 %v120_v47, %v93_v56 }
  0x8f   :  { %v125_v50 = vpop.permute.xlu1 %124 }
  0x90   :  { %v142_v0 = vadd.f32 %v125_v50, %v94_v59 }
  0x92   :  { %v53_v51 = vpop.permute.xlu0 %52 }
  0x93   :  { %v63_v53 = vpop.permute.xlu1 %62  ;;  %v90_v23 = vmul.f32 %v717_v33, %v53_v51 }
  0x94   :  { %v92_v6 = vmul.f32 %v717_v33, %v63_v53 }
  0x96   :  { %v140_v10 = vadd.f32 %v115_v49, %v92_v6 }
  0x97   :  { %v171_v54 = vpop.permute.xlu0 %170 }
  0x98   :  { %v187_v57 = vmul.f32 %v721_v38, %v171_v54  ;;  %v163_v58 = vpop.permute.xlu1 %162 }
  0x99   :  { %v185_v61 = vmul.f32 %v721_v38, %v163_v58 }
  0x9a   :  { %v195_v60 = vadd.f32 %v187_v57, %v143_v55 }
  0x9b   :  { %v167_v62 = vpop.permute.xlu0 %166  ;;  %v193_v3 = vadd.f32 %v185_v61, %v141_v63 }
  0x9c   :  { %v203_v1 = vmax.f32 %v195_v60, 0.0  ;;  %v186_v2 = vmul.f32 %v721_v38, %v167_v62 }
  0x9d   :  { %v58_v5 = vpop.permute.xlu1 %57  ;;  %v201_v8 = vmax.f32 %v193_v3, 0.0 }
  0x9e   :  { %v194_v4 = vadd.f32 %v186_v2, %v142_v0  ;;  %525 = vmatprep.subr.mxu0 %v203_v1  ;;  %v91_v14 = vmul.f32 %v717_v33, %v58_v5 }
  0x9f   :  { %526 = vmatpush3.msra.mxu0 %v203_v1  ;;  %v155_v12 = vpop.permute.xlu0 %154 }
  0xa0   :  { %v202_v7 = vmax.f32 %v194_v4, 0.0  ;;  %v183_v17 = vmul.f32 %v721_v38, %v155_v12 }
  0xa2   :  { %527 = vmatprep.subr.mxu0 %v202_v7  ;;  %v159_v9 = vpop.permute.xlu1 %158 }
  0xa3   :  { %528 = vmatpush3.msra.mxu0 %v202_v7  ;;  %v184_v11 = vmul.f32 %v721_v38, %v159_v9  ;;  %v151_v20 = vpop.permute.xlu0 %150 }
  0xa4   :  { %529 = vmatprep.subr.mxu0 %v201_v8  ;;  %v182_v25 = vmul.f32 %v721_v38, %v151_v20 }
  0xa5   :  { %530 = vmatpush3.msra.mxu0 %v201_v8  ;;  %v192_v13 = vadd.f32 %v184_v11, %v140_v10 }
  0xa7   :  { %v200_v15 = vmax.f32 %v192_v13, 0.0  ;;  %v110_v16 = vpop.permute.xlu1 %109  ;;  %v147_v27 = vpop.permute.xlu0 %146 }
  0xa8   :  { %v139_v18 = vadd.f32 %v110_v16, %v91_v14  ;;  %v181_v34 = vmul.f32 %v721_v38, %v147_v27  ;;  %v209_v38 = vld [vmem:[%s778_s3 + $0x20] sm:$0xff] }
  0xa9   :  { %531 = vmatprep.subr.mxu0 %v200_v15  ;;  %v399_v14 = vld [vmem:[%s781_s5] sm:$0x1] }
  0xaa   :  { %v191_v19 = vadd.f32 %v183_v17, %v139_v18  ;;  %532 = vmatpush3.msra.mxu0 %v200_v15 }
  0xab   :  { %v48_v21 = vpop.permute.xlu1 %47 }
  0xac   :  { %v199_v22 = vmax.f32 %v191_v19, 0.0  ;;  %v89_v28 = vmul.f32 %v717_v33, %v48_v21  ;;  %v208_v33 = vld [vmem:[%s778_s3 + $0x18] sm:$0xff]  ;;  %v254_v52 = vpop.permute.xlu0 %253 }
  0xae   :  { %533 = vmatprep.subr.mxu0 %v199_v22 }
  0xaf   :  { %v105_v24 = vpop.permute.xlu1 %104  ;;  %534 = vmatpush3.msra.mxu0 %v199_v22 }
  0xb0   :  { %v138_v26 = vadd.f32 %v105_v24, %v90_v23  ;;  %v239_v58 = vpop.permute.xlu0 %238 }
  0xb2   :  { %v190_v29 = vadd.f32 %v182_v25, %v138_v26 }
  0xb3   :  { %v100_v32 = vpop.permute.xlu1 %99 }
  0xb4   :  { %v198_v35 = vmax.f32 %v190_v29, 0.0  ;;  %v137_v36 = vadd.f32 %v100_v32, %v89_v28  ;;  %v229_v4 = vpop.permute.xlu0 %228 }
  0xb6   :  { %v189_v37 = vadd.f32 %v181_v34, %v137_v36  ;;  %535 = vmatprep.subr.mxu0 %v198_v35 }
  0xb7   :  { %536 = vmatpush3.msra.mxu0 %v198_v35  ;;  %v259_v46 = vpop.permute.xlu1 %258 }
  0xb8   :  { %v197_v39 = vmax.f32 %v189_v37, 0.0  ;;  %v404_v15 = vpop.permute.xlu0 %403 }
  0xb9   :  { %v409_v16 = vrot.slane %v404_v15, %v87_v31 }
  0xba   :  { %537 = vmatprep.subr.mxu0 %v197_v39 }
  0xbb   :  { %538 = vmatpush3.msra.mxu0 %v197_v39  ;;  %v249_v50 = vpop.permute.xlu1 %248 }
  0xbc   :  { %540 = vmatmul.mubr.msk.f32.vlgmr.msra.gmra.mxu0 %vm261_vm0, %v206_v40 }
  0xbd   :  { %542 = vmatprep.mubr.msk.f32.mxu0 %vm261_vm0, %v207_v41 }
  0xbf   :  { %v244_v55 = vpop.permute.xlu1 %243 }
  0xc0   :  { %543 = vmatmul.mubr.msk.f32.gmra.mxu0 %vm261_vm0, %v208_v33 }
  0xc1   :  { %545 = vmatprep.mubr.msk.f32.mxu0 %vm261_vm0, %v209_v38 }
  0xc3   :  { %v234_v1 = vpop.permute.xlu1 %233 }
  0xc4   :  { %546 = vmatmul.mubr.msk.f32.gmra.mxu0 %vm261_vm0, %v210_v42 }
  0xc5   :  { %548 = vmatprep.mubr.msk.f32.mxu0 %vm261_vm0, %v211_v43 }
  0xc7   :  { %v224_v9 = vpop.permute.xlu1 %223 }
  0xc8   :  { %549 = vmatmul.mubr.msk.f32.gmra.mxu0 %vm261_vm0, %v212_v44 }
 0x17c   :  { %v541_v47 = vpop.f32.mrf.mxu0 }
 0x17d   :  { %v358_v7 = vadd.f32 %v541_v47, %v229_v4 }
 0x17e   :  { %v352_v48 = vpop.f32.mrf.mxu0 }
 0x17f   :  { %v353_v10 = vadd.f32 %v352_v48, %v224_v9  ;;  %v392_v12 = vmax.f32 %v358_v7, 0.0 }
 0x180   :  { %v544_v49 = vpop.f32.mrf.mxu0 }
 0x181   :  { %v368_v2 = vadd.f32 %v544_v49, %v239_v58  ;;  %v391_v13 = vmax.f32 %v353_v10, 0.0 }
 0x182   :  { %v362_v51 = vpop.f32.mrf.mxu0 }
 0x183   :  { %v363_v5 = vadd.f32 %v362_v51, %v234_v1  ;;  %v394_v8 = vmax.f32 %v368_v2, 0.0 }
 0x184   :  { %v547_v53 = vpop.f32.mrf.mxu0 }
 0x185   :  { %v378_v60 = vadd.f32 %v547_v53, %v249_v50  ;;  %v393_v11 = vmax.f32 %v363_v5, 0.0 }
 0x186   :  { %v372_v54 = vpop.f32.mrf.mxu0 }
 0x187   :  { %v373_v63 = vadd.f32 %v372_v54, %v244_v55  ;;  %v396_v3 = vmax.f32 %v378_v60, 0.0 }
 0x188   :  { %v550_v56 = vpop.f32.mrf.mxu0 }
 0x189   :  { %v388_v57 = vadd.f32 %v550_v56, %v259_v46  ;;  %v395_v6 = vmax.f32 %v373_v63, 0.0 }
 0x18a   :  { %v382_v59 = vpop.f32.mrf.mxu0 }
 0x18b   :  { %v398_v61 = vmax.f32 %v388_v57, 0.0  ;;  %v383_v62 = vadd.f32 %v382_v59, %v254_v52 }
 0x18d   :  { %v397_v0 = vmax.f32 %v383_v62, 0.0  ;;  %552 = vmatpush3.msra.mxu1 %v398_v61 }
 0x18e   :  { %553 = vmatprep.subr.mxu1 %v588_v45 }
 0x18f   :  { %554 = vmatpush3.msra.mxu1 %v397_v0 }
 0x190   :  { %555 = vmatprep.subr.mxu1 %v588_v45 }
 0x191   :  { %556 = vmatpush3.msra.mxu1 %v396_v3 }
 0x192   :  { %557 = vmatprep.subr.mxu1 %v588_v45 }
 0x193   :  { %558 = vmatpush3.msra.mxu1 %v395_v6 }
 0x194   :  { %559 = vmatprep.subr.mxu1 %v588_v45 }
 0x195   :  { %560 = vmatpush3.msra.mxu1 %v394_v8 }
 0x196   :  { %561 = vmatprep.subr.mxu1 %v588_v45 }
 0x197   :  { %562 = vmatpush3.msra.mxu1 %v393_v11 }
 0x198   :  { %563 = vmatprep.subr.mxu1 %v588_v45 }
 0x199   :  { %564 = vmatpush3.msra.mxu1 %v392_v12 }
 0x19a   :  { %565 = vmatprep.subr.mxu1 %v588_v45 }
 0x19b   :  { %566 = vmatpush3.msra.mxu1 %v391_v13 }
 0x19c   :  { %568 = vmatmul.mubr.msk.f32.vlgmr.msra.gmra.mxu1 %vm261_vm0, %v399_v14 }
 0x25c   :  { %v479_v17 = vpop.f32.mrf.mxu1 }
 0x25d   :  { %v480_v18 = vadd.f32 %v479_v17, %v409_v16 }
 0x25e   :  { %v569_v19 = vpop.f32.mrf.mxu1 }
 0x25f   :  { %584 = vtanh.f32 %v480_v18 }
 0x26c   :  { %v585_v20 = vpop.eup %584 }
 0x26d   :  { %484 = vst [vmem:[%s782_s7] sm:$0x1] %v585_v20 }

</bundles_post_ra>
